<compile_context>
chip_gen: v5e
topology: v5e:2x2
jax: 0.10.0
libtpu: 0.0.40
codegen_flags: <defaults>
</compile_context>

<pallas_src>
from functools import lru_cache

import jax
import jax.numpy as jnp
from jax import lax
from jax.experimental import pallas as pl
from jax.experimental.pallas import tpu as pltpu

_EPS = 1e-12          # torch F.normalize default eps
_LANE = 128


def _ceil_div(a, b):
    return -(-a // b)


@lru_cache(maxsize=None)
def _tiling_config():
    """(vmem_budget_bytes, vmem_limit_bytes, max_tile_hw) gated on chip VMEM."""
    try:
        vmem = int(pltpu.get_tpu_info().vmem_capacity_bytes)
    except Exception:
        vmem = 64 * 1024 * 1024                       # conservative fallback
    if vmem >= 128 * 1024 * 1024:                     # v5e / v6e
        return 24 * 1024 * 1024, 64 * 1024 * 1024, 4096
    # v7x (64 MiB per TensorCore) or unknown: stay conservative
    return 12 * 1024 * 1024, 32 * 1024 * 1024, 2048


def _pick_tile_hw(n, c_in, c_out, hw, in_itemsize, out_itemsize):
    """Largest lane-dense (multiple-of-128) spatial tile whose double-buffered
    input + output blocks stay under the per-chip VMEM budget."""
    budget, _, max_tile = _tiling_config()
    if hw <= _LANE:
        return hw                                     # full-dim tile, always legal
    per_lane = 2 * c_in * int(in_itemsize) + 2 * c_out * int(out_itemsize)
    budget_lanes = max(_LANE, (budget // per_lane) // _LANE * _LANE)
    tile = min(max_tile, budget_lanes)                # multiple of 128
    if tile >= hw:
        tile = hw                                     # single full-dim tile
    # v7x has 2 TensorCores: make sure the parallel grid has >= 2 points.
    if n == 1 and tile == hw and tile % (2 * _LANE) == 0:
        tile //= 2
    return tile


# --------------------------------------------------------------------------
# Kernels
# --------------------------------------------------------------------------

def _silu_f32(y):
    # y * sigmoid(y).  exp and the approximate reciprocal both run on the EUP
    # slot, so no VALU divide is issued.
    return y * pl.reciprocal(1.0 + jnp.exp(-y), approx=True)


def _chan_rmsnorm_silu_kernel(x_ref, b_ref, g_ref, o_ref):
    # Fused: conv-bias add -> F.normalize(dim=channels) -> * sqrt(C)*(gamma+1) -> SiLU.
    # x_ref: (C, TILE_HW); the reduction is over sublanes only, so a partial
    # (masked) last HW tile is safe: garbage lanes never leak across lanes.
    x = x_ref[...].astype(jnp.float32) + b_ref[...]
    sq_sum = jnp.sum(x * x, axis=0, keepdims=True)           # (1, TILE_HW), XLU
    # 1/max(||x||, eps) == rsqrt(max(||x||^2, eps^2)); 1e-24 is a normal f32.
    inv = lax.rsqrt(jnp.maximum(sq_sum, _EPS * _EPS))         # EUP
    y = x * inv * g_ref[...]
    o_ref[...] = _silu_f32(y).astype(o_ref.dtype)


def _conv1x1_silu_kernel(x_ref, w_ref, b_ref, o_ref):
    # 1x1 conv as MXU matmul: (C_out, C_in) @ (C_in, TILE_HW) + bias -> SiLU.
    # Operands stay in the activation dtype (bf16 -> native bf16 MXU); accum f32.
    y = jnp.dot(w_ref[...], x_ref[...], preferred_element_type=jnp.float32)
    y = y + b_ref[...]
    o_ref[...] = _silu_f32(y).astype(o_ref.dtype)


# --------------------------------------------------------------------------
# Pallas wrappers
# --------------------------------------------------------------------------

def chan_rmsnorm_silu(x, bias, gamma, *, tile_hw=None):
    """SiLU( ChanRMSNorm( x + bias ) ), ChanRMSNorm == F.normalize(dim=1)*sqrt(C)*(gamma+1)."""
    n, c, h, w = x.shape
    hw = h * w
    itemsize = int(x.dtype.itemsize)
    if tile_hw is None:
        tile_hw = _pick_tile_hw(n, c, c, hw, itemsize, itemsize)
    nt = _ceil_div(hw, tile_hw)
    xf = x.reshape(n, c, hw)                         # free: no pad, no copy
    b = bias.astype(jnp.float32).reshape(c, 1)
    g = ((float(c) ** 0.5) * (gamma.astype(jnp.float32) + 1.0)).reshape(c, 1)
    _, vmem_limit, _ = _tiling_config()

    out = pl.pallas_call(
        _chan_rmsnorm_silu_kernel,
        out_shape=jax.ShapeDtypeStruct((n, c, hw), x.dtype),
        grid_spec=pltpu.PrefetchScalarGridSpec(
            num_scalar_prefetch=0,
            grid=(n, nt),
            in_specs=[
                pl.BlockSpec((None, c, tile_hw), lambda i, s: (i, 0, s)),
                pl.BlockSpec((c, 1), lambda i, s: (0, 0)),
                pl.BlockSpec((c, 1), lambda i, s: (0, 0)),
            ],
            out_specs=pl.BlockSpec((None, c, tile_hw), lambda i, s: (i, 0, s)),
        ),
        compiler_params=pltpu.CompilerParams(
            dimension_semantics=("parallel", "parallel"),
            vmem_limit_bytes=vmem_limit,
        ),
        cost_estimate=pl.CostEstimate(
            flops=8 * n * c * hw,
            transcendentals=2 * n * c * hw,
            bytes_accessed=2 * n * c * hw * itemsize,
        ),
    )(xf, b, g)
    return out.reshape(n, c, h, w)


def conv1x1_silu(x, weight, bias, *, tile_hw=None):
    """SiLU( Conv2d 1x1 (weight: (C_out, C_in), bias: (C_out,)) applied to NCHW x )."""
    n, c_in, h, w = x.shape
    c_out = weight.shape[0]
    hw = h * w
    itemsize = int(x.dtype.itemsize)
    if tile_hw is None:
        tile_hw = _pick_tile_hw(n, c_in, c_out, hw, itemsize, itemsize)
    nt = _ceil_div(hw, tile_hw)
    xf = x.reshape(n, c_in, hw)
    wm = weight.reshape(c_out, c_in).astype(x.dtype)   # bf16 x -> bf16 MXU operands
    b = bias.astype(jnp.float32).reshape(c_out, 1)
    _, vmem_limit, _ = _tiling_config()

    out = pl.pallas_call(
        _conv1x1_silu_kernel,
        out_shape=jax.ShapeDtypeStruct((n, c_out, hw), x.dtype),
        grid_spec=pltpu.PrefetchScalarGridSpec(
            num_scalar_prefetch=0,
            grid=(n, nt),
            in_specs=[
                pl.BlockSpec((None, c_in, tile_hw), lambda i, s: (i, 0, s)),
                pl.BlockSpec((c_out, c_in), lambda i, s: (0, 0)),
                pl.BlockSpec((c_out, 1), lambda i, s: (0, 0)),
            ],
            out_specs=pl.BlockSpec((None, c_out, tile_hw), lambda i, s: (i, 0, s)),
        ),
        compiler_params=pltpu.CompilerParams(
            dimension_semantics=("parallel", "parallel"),
            vmem_limit_bytes=vmem_limit,
        ),
        cost_estimate=pl.CostEstimate(
            flops=2 * n * c_out * c_in * hw + 5 * n * c_out * hw,
            transcendentals=2 * n * c_out * hw,
            bytes_accessed=(n * (c_in + c_out) * hw + c_out * c_in) * itemsize,
        ),
    )(xf, wm, b)
    return out.reshape(n, c_out, h, w)


# --------------------------------------------------------------------------
# Discriminator forward (spatial convs on XLA, fused epilogues in Pallas)
# --------------------------------------------------------------------------

def _conv2d(x, weight, stride, padding, precision=None):
    return lax.conv_general_dilated(
        x, weight,
        window_strides=(stride, stride),
        padding=((padding, padding), (padding, padding)),
        dimension_numbers=("NCHW", "OIHW", "NCHW"),
        precision=precision,        # default MXU precision: spatial convs dominate FLOPs
    )


def init_discriminator_params(key, dims, channels=3, init_kernel_size=5):
    keys = iter(jax.random.split(key, 4 + 3 * len(dims)))

    def conv_w(k, c_out, c_in, kh, kw):
        fan_in = c_in * kh * kw
        return jax.random.normal(k, (c_out, c_in, kh, kw), jnp.float32) / jnp.sqrt(fan_in)

    first_dim, last_dim = dims[0], dims[-1]
    params = {"init_kernel_size": init_kernel_size}
    params["layer0"] = (
        conv_w(next(keys), first_dim, channels, init_kernel_size, init_kernel_size),
        0.01 * jax.random.normal(next(keys), (first_dim,), jnp.float32),
    )
    blocks = []
    for d_in, d_out in zip(dims[:-1], dims[1:]):
        w = conv_w(next(keys), d_out, d_in, 4, 4)
        b = 0.01 * jax.random.normal(next(keys), (d_out,), jnp.float32)
        # nn.Parameter(zeros) init; small perturbation so the gamma path is exercised.
        gamma = 0.01 * jax.random.normal(next(keys), (d_out,), jnp.float32)
        blocks.append((w, b, gamma))
    params["blocks"] = blocks
    params["to_logits"] = (
        conv_w(next(keys), last_dim, last_dim, 1, 1),
        0.01 * jax.random.normal(next(keys), (last_dim,), jnp.float32),
        conv_w(next(keys), 1, last_dim, 4, 4),
        0.01 * jax.random.normal(next(keys), (1,), jnp.float32),
    )
    return params


def discriminator_forward(params, x):
    """Discriminator.forward(x) with is_real=None -> returns preds."""
    w0, b0 = params["layer0"]
    x = _conv2d(x, w0, 1, params["init_kernel_size"] // 2)
    # Plain bias+SiLU: no cross-channel reduce, XLA fuses it into the conv
    # epilogue for free (a Pallas call here would add an HBM round trip of the
    # largest activation in the network).
    x = jax.nn.silu(x + b0.reshape(1, -1, 1, 1))
    for (w, b, gamma) in params["blocks"]:
        x = _conv2d(x, w, 2, 1)
        x = chan_rmsnorm_silu(x, b, gamma)                 # Pallas (bias+norm+SiLU)
    w1, b1, w2, b2 = params["to_logits"]
    x = conv1x1_silu(x, w1[:, :, 0, 0], b1)                # Pallas (MXU matmul+bias+SiLU)
    preds = _conv2d(x, w2, 1, 0) + b2.reshape(1, -1, 1, 1)
    return preds


# --------------------------------------------------------------------------
# Pure-JAX references
# --------------------------------------------------------------------------

def _chan_rmsnorm_ref(x, gamma):
    c = x.shape[1]
    norm = jnp.sqrt(jnp.sum(x.astype(jnp.float32) ** 2, axis=1, keepdims=True))
    normalized = x / jnp.maximum(norm, _EPS)
    return normalized * (float(c) ** 0.5) * (gamma.reshape(1, c, 1, 1) + 1.0)


def _reference_forward(params, x):
    w0, b0 = params["layer0"]
    x = jax.nn.silu(_conv2d(x, w0, 1, params["init_kernel_size"] // 2)
                    + b0.reshape(1, -1, 1, 1))
    for (w, b, gamma) in params["blocks"]:
        x = _conv2d(x, w, 2, 1) + b.reshape(1, -1, 1, 1)
        x = jax.nn.silu(_chan_rmsnorm_ref(x, gamma))
    w1, b1, w2, b2 = params["to_logits"]
    # HIGHEST here matches the f32 MXU dot the Pallas 1x1 kernel performs when
    # activations are f32 (the spatial convs above are the identical op in
    # both paths, so they contribute zero difference).
    x = jax.nn.silu(_conv2d(x, w1, 1, 0, precision=lax.Precision.HIGHEST)
                    + b1.reshape(1, -1, 1, 1))
    return _conv2d(x, w2, 1, 0) + b2.reshape(1, -1, 1, 1)


if __name__ == "__main__":
    key = jax.random.PRNGKey(0)
    kp, kx, kg, kb = jax.random.split(key, 4)

    # Tolerances are 5e-3: the kernels use pl.reciprocal(approx=True) in SiLU
    # (deliberate precision/perf trade per the review); everything else is f32.

    # 1) Standalone fused bias + ChanRMSNorm + SiLU kernel.
    N, C, H, W = 2, 4, 16, 16
    x_small = jax.random.normal(kx, (N, C, H, W), dtype=jnp.float32)
    gamma = 0.01 * jax.random.normal(kg, (C,), dtype=jnp.float32)
    bias = 0.01 * jax.random.normal(kb, (C,), dtype=jnp.float32)
    out = jax.block_until_ready(chan_rmsnorm_silu(x_small, bias, gamma))
    ref = jax.nn.silu(_chan_rmsnorm_ref(x_small + bias.reshape(1, C, 1, 1), gamma))
    assert out.shape == (N, C, H, W)
    assert jnp.allclose(out, ref, atol=5e-3, rtol=5e-3), "ChanRMSNorm+SiLU mismatch"

    # 2) Same kernel with a forced small tile so HW is NOT a tile multiple:
    #    exercises the partial-tile (masked last block) path that replaced pad/slice.
    N2, C2, H2, W2 = 2, 8, 16, 20                          # HW = 320 = 2*128 + 64
    x_rag = jax.random.normal(kx, (N2, C2, H2, W2), dtype=jnp.float32)
    gamma2 = 0.01 * jax.random.normal(kg, (C2,), dtype=jnp.float32)
    bias2 = 0.01 * jax.random.normal(kb, (C2,), dtype=jnp.float32)
    out2 = jax.block_until_ready(chan_rmsnorm_silu(x_rag, bias2, gamma2, tile_hw=128))
    ref2 = jax.nn.silu(_chan_rmsnorm_ref(x_rag + bias2.reshape(1, C2, 1, 1), gamma2))
    assert jnp.allclose(out2, ref2, atol=5e-3, rtol=5e-3), "partial-tile mismatch"

    # 3) Full Discriminator forward (is_real=None -> preds), Pallas epilogues vs pure-JAX.
    dims, channels = (32, 64), 3
    params = init_discriminator_params(kp, dims, channels=channels, init_kernel_size=5)
    x = jax.random.normal(kx, (2, channels, 16, 16), dtype=jnp.float32)
    preds = jax.block_until_ready(discriminator_forward(params, x))
    preds_ref = _reference_forward(params, x)
    assert preds.shape == (2, 1, 5, 5)
    max_diff = float(jnp.max(jnp.abs(preds - preds_ref)))
    assert jnp.allclose(preds, preds_ref, atol=5e-3, rtol=5e-3), f"preds mismatch {max_diff}"

    print("KERNEL_OK")
</pallas_src>

<mosaic_0001>
module attributes {stable_mosaic.version = 11 : i64} {
  func.func @_chan_rmsnorm_silu_kernel(%arg0: i32, %arg1: i32, %arg2: memref<1x4x256xf32, #tpu.memory_space<vmem>>, %arg3: memref<4x1xf32, #tpu.memory_space<vmem>>, %arg4: memref<4x1xf32, #tpu.memory_space<vmem>>, %arg5: memref<1x4x256xf32, #tpu.memory_space<vmem>>) attributes {dimension_semantics = [#tpu.dimension_semantics<parallel>, #tpu.dimension_semantics<parallel>], iteration_bounds = array<i64: 2, 1>, scalar_prefetch = 0 : i64, scratch_operands = 0 : i64, tpu.core_type = #tpu.core_type<tc>, window_params = [{transform_indices = @transform_0, window_bounds = array<i64: 1, 4, 256>}, {pipeline_mode = #tpu.pipeline_mode<synchronous>, transform_indices = @transform_1, window_bounds = array<i64: 4, 1>}, {pipeline_mode = #tpu.pipeline_mode<synchronous>, transform_indices = @transform_2, window_bounds = array<i64: 4, 1>}, {transform_indices = @transform_3, window_bounds = array<i64: 1, 4, 256>}]} {
    %c0 = arith.constant 0 : index
    %c0_0 = arith.constant 0 : index
    %c0_1 = arith.constant 0 : index
    %0 = vector.load %arg2[%c0, %c0_0, %c0_1] : memref<1x4x256xf32, #tpu.memory_space<vmem>>, vector<1x4x256xf32>
    %1 = vector.shape_cast %0 : vector<1x4x256xf32> to vector<4x256xf32>
    %c0_2 = arith.constant 0 : index
    %c0_3 = arith.constant 0 : index
    %2 = vector.load %arg3[%c0_2, %c0_3] : memref<4x1xf32, #tpu.memory_space<vmem>>, vector<4x1xf32>
    %3 = vector.broadcast %2 : vector<4x1xf32> to vector<4x256xf32>
    %4 = arith.addf %1, %3 : vector<4x256xf32>
    %5 = arith.mulf %4, %4 : vector<4x256xf32>
    %cst = arith.constant dense<0.000000e+00> : vector<256xf32>
    %6 = vector.multi_reduction <add>, %5, %cst [0] : vector<4x256xf32> to vector<256xf32>
    %7 = vector.shape_cast %6 : vector<256xf32> to vector<1x256xf32>
    %cst_4 = arith.constant 1.000000e-24 : f32
    %8 = vector.broadcast %cst_4 : f32 to vector<1x256xf32>
    %9 = arith.maximumf %7, %8 : vector<1x256xf32>
    %10 = math.rsqrt %9 : vector<1x256xf32>
    %11 = vector.broadcast %10 : vector<1x256xf32> to vector<4x256xf32>
    %12 = arith.mulf %4, %11 : vector<4x256xf32>
    %c0_5 = arith.constant 0 : index
    %c0_6 = arith.constant 0 : index
    %13 = vector.load %arg4[%c0_5, %c0_6] : memref<4x1xf32, #tpu.memory_space<vmem>>, vector<4x1xf32>
    %14 = vector.broadcast %13 : vector<4x1xf32> to vector<4x256xf32>
    %15 = arith.mulf %12, %14 : vector<4x256xf32>
    %cst_7 = arith.constant 0.000000e+00 : f32
    %16 = vector.broadcast %cst_7 : f32 to vector<4x256xf32>
    %17 = arith.subf %16, %15 : vector<4x256xf32>
    %18 = math.exp %17 : vector<4x256xf32>
    %cst_8 = arith.constant 1.000000e+00 : f32
    %19 = vector.broadcast %cst_8 : f32 to vector<4x256xf32>
    %20 = arith.addf %19, %18 : vector<4x256xf32>
    %21 = tpu.reciprocal %20 {approx = true} : vector<4x256xf32> -> vector<4x256xf32>
    %22 = arith.mulf %15, %21 : vector<4x256xf32>
    %c0_9 = arith.constant 0 : index
    %c0_10 = arith.constant 0 : index
    %c0_11 = arith.constant 0 : index
    %23 = vector.load %arg5[%c0_9, %c0_10, %c0_11] : memref<1x4x256xf32, #tpu.memory_space<vmem>>, vector<1x4x256xf32>
    %24 = vector.shape_cast %23 : vector<1x4x256xf32> to vector<4x256xf32>
    %25 = vector.shape_cast %22 : vector<4x256xf32> to vector<1x4x256xf32>
    tpu.vector_store %arg5[%c0_9, %c0_10, %c0_11], %25 {strides = array<i32>} : memref<1x4x256xf32, #tpu.memory_space<vmem>>, vector<1x4x256xf32>,
    return
  }
  func.func @transform_0(%arg0: i32, %arg1: i32) -> (i32, i32, i32) {
    %c0_i32 = arith.constant 0 : i32
    %c0_i32_0 = arith.constant 0 : i32
    return %arg0, %c0_i32, %arg1 : i32, i32, i32
  }
  func.func @transform_1(%arg0: i32, %arg1: i32) -> (i32, i32) {
    %c0_i32 = arith.constant 0 : i32
    %c0_i32_0 = arith.constant 0 : i32
    %c0_i32_1 = arith.constant 0 : i32
    return %c0_i32, %c0_i32_0 : i32, i32
  }
  func.func @transform_2(%arg0: i32, %arg1: i32) -> (i32, i32) {
    %c0_i32 = arith.constant 0 : i32
    %c0_i32_0 = arith.constant 0 : i32
    %c0_i32_1 = arith.constant 0 : i32
    return %c0_i32, %c0_i32_0 : i32, i32
  }
  func.func @transform_3(%arg0: i32, %arg1: i32) -> (i32, i32, i32) {
    %c0_i32 = arith.constant 0 : i32
    %c0_i32_0 = arith.constant 0 : i32
    return %arg0, %c0_i32, %arg1 : i32, i32, i32
  }
}

</mosaic_0001>

<bundles_post_ra>
// kernel: tpu_custom_call.1
= control target key start
LH: loop header
LB: loop body
LE: loop exit
PB: predicated region body
PF: predicated region fallthrough
CT: control target
= control target key end

     0   :  { %8 = vsyncpa [#allocation3], 0  ;;  %s751_s0 = inlined_call_operand.hbm [shape: f32[2,4,256], index: 0, kind: input, shape index: {}]   ;;  %s752_s1 = inlined_call_operand.vmem [shape: f32[4,1], index: 1, kind: input, shape index: {}]   ;;  %s753_s2 = inlined_call_operand.vmem [shape: f32[4,1], index: 2, kind: input, shape index: {}]   ;;  %s754_s3 = inlined_call_operand.hbm [shape: f32[2,4,256], index: 3, kind: output, shape index: {}]  }
   0x1   :  { %10 = vsyncpa [#allocation3 + $0x1], 0 }
   0x2   :  { %11 = vsyncpa [#allocation4], 0 }
   0x3   :  { %13 = vsyncpa [#allocation4 + $0x1], 0  ;;  %s618_s12 = smov 0   ;;  %s620_s13 = smov 0  }
   0x4   :  { %s622_s14 = smov 0   ;;  %s624_s15 = smov 0  }
   0x5   :  { %s626_s16 = smov 0   ;;  %s628_s17 = smov 0  }
   0x6 LB: > { %s392_s18 = sadd.s32 4294967295, %s594_s17   ;;  %s393_s19 = sadd.s32 4294967294, %s594_s17   ;;  %s594_s17 = sphi %s628_s17, %s19_s17   ;;  %s590_s16 = sphi %s626_s16, %s763_s16   ;;  %s586_s15 = sphi %s624_s15, %s762_s15   ;;  %s582_s14 = sphi %s622_s14, %s761_s14   ;;  %s578_s13 = sphi %s620_s13, %s760_s13   ;;  %s574_s12 = sphi %s618_s12, %s759_s12  }
   0x7   : > { %s31_s20 = sadd.s32 1, %s590_s16  ;;  %s40_s21 = sadd.s32 1, %s582_s14 }
   0x8   : > { %p33_p0 = scmp.ge.s32.totalorder %s31_s20, 2  ;;  %p47_p1 = scmp.ne.s32.totalorder %s582_s14, %s578_s13 }
   0x9   : > { %p48_p2 = scmp.eq.s32.totalorder %s594_s17, 0  ;;  %p53_p3 = scmp.ne.s32.totalorder %s578_s13, %s574_s12 }
   0xa   : > { %s765_s20 = smov (%p33_p0, %s31_s20), 0  ;;  %p54_p5 = scmp.eq.s32.totalorder %s392_s18, 0 }
   0xb   : > { %p659_p4 = por %p48_p2, %p47_p1  ;;  %s35_s23 = ssub.s32 %s590_s16, %s765_s20 }
   0xc   : > { %p121_p6 = scmp.eq.s32.totalorder %s392_s18, 1  ;;  %p38_p7 = scmp.eq.s32.totalorder %s35_s23, 0 }
   0xd   : > { %p665_p8 = por %p54_p5, %p53_p3  ;;  %p127_p10 = scmp.eq.s32.totalorder %s393_s19, 1 }
   0xe   : > { %p669_p9 = por %p121_p6, %p47_p1  ;;  %p395_p12 = scmp.ge.s32.totalorder %s594_s17, 2 }
   0xf   : > { %s674_s26 = scalar_select %p38_p7, %s582_s14, %s40_s21  }
  0x10   : > { %p676_p11 = por %p127_p10, %p53_p3  ;;  %p421_p13 = scmp.lt.s32.totalorder %s594_s17, 2 }
  0x11   : > { %s153_s28 = sand.u32 1, %s582_s14   ;;  %s407_s30 = sshll.u32 %s590_s16, 3 }
  0x12   : > { %s396_s29 = sshll.u32 %s153_s28, 3  ;;  %s164_s6 = scalar_lea.hbm %s751_s0, %s407_s30 }
  0x13   : > { %s157_s7 = scalar_lea.vmem [#allocation2], %s396_s29  ;;  %s166_s9 = sshll.u32 %s164_s6, 4  ;;  %s167_s9 = int_to_ptr.hbm [resolvable:$true] %s166_s9 }
  0x14   : > { %s168_s8 = sshll.u32 %s157_s7, 4  ;;  %p414_p0 = pnand %p421_p13, %p659_p4  ;;  %s169_s8 = int_to_ptr.vmem [resolvable:$true] %s168_s8 }
  0x15   : > { %p399_p1 = scmp.ge.s32.totalorder %s594_s17, 1  ;;  %p173_p2 = scmp.lt.s32.totalorder %s594_s17, 3 }
  0x16   : > { %s154_s10 = scalar_lea.sflag [#allocation3], %s153_s28 }
  0x17   : > { %416 = dma.hbm_to_vmem [thread:$0]  (!%p414_p0), %s167_s9, 128, %s169_s8, %s154_s10  }
  0x18   : > { %p174_p3 = pnand %p399_p1, %p173_p2 }
  0x19   : > { %s692_s11 = sand.u32 (!%p174_p3), 1, %s578_s13  }
  0x1a   : > { %177 = sbr.rel (%p174_p3) target bundleno = 229 (0xe5), region = 32  ;;  %s400_s18 = sshll.u32 (!%p174_p3), %s692_s11, 3 }
  0x1b   : > { %s180_s19 = scalar_lea.sflag (!%p174_p3), [#allocation3], %s692_s11  ;;  %s183_s21 = scalar_lea.vmem (!%p174_p3), [#allocation2], %s400_s18 }
  0x1f   : > { %565 = dma.done.wait (%p665_p8), %s180_s19, 128  }
  0x20   : > { %567 = vsyncadd (%p665_p8), %s180_s19, 4294967168  ;;  %v596_v0 = vmov 0   ;;  %v210_v1 = vld [vmem:[%s752_s1] sm:$0xf]  ;;  %v597_v3 = vmov 839922192  }
  0x21   : > { %473 = vset.pattern.permute.xlu0 %v596_v0  ;;  %v271_v2 = vld [vmem:[%s753_s2] sm:$0xf]  ;;  %v216_v4 = vunpack.c.l.s4 %v597_v3  ;;  %v209_v7 = vld [vmem:[%s183_s21] sm:$0xff]  ;;  %vm228_vm0 = vcmask 1043456   ;;  %s408_s24 = sshll.u32 %s586_s15, 3  ;;  %s206_s6 = scalar_lea.vmem [#allocation5], %s400_s18 }
  0x22   : > { %213 = vperm.xlu0 %473, %v210_v1   ;;  %s303_s5 = scalar_lea.hbm %s754_s3, %s408_s24  ;;  %s305_s7 = sshll.u32 %s206_s6, 4  ;;  %s306_s7 = int_to_ptr.vmem [resolvable:$true] %s305_s7 }
  0x23   : > { %v217_v5 = vunpack.c.0.s8 %v216_v4  ;;  %s307_s8 = sshll.u32 %s303_s5, 4  ;;  %s290_s9 = scalar_lea.sflag [#allocation4], %s692_s11  ;;  %s308_s8 = int_to_ptr.hbm [resolvable:$true] %s307_s8 }
  0x24   : > { %s526_s10 = sshra.s32 %s308_s8, 4  ;;  %s532_s22 = scalar_lea.hbm %s754_s3, 16  ;;  %s527_s10 = int_to_ptr.hbm [resolvable:$true] %s526_s10 }
  0x25   : > { %s528_s19 = scalar_lea.hbm %s527_s10, 8  ;;  %p533_p7 = scmp.lt.s32.totalorder %s527_s10, %s754_s3 }
  0x26   : > { %p529_p4 = scmp.ne.s32.totalorder %s527_s10, %s528_s19  ;;  %p534_p8 = scmp.lt.s32.totalorder %s532_s22, %s528_s19 }
  0x28   : > { %p530_p5 = pnand %p529_p4, %p669_p9  ;;  %p535_p10 = por %p534_p8, %p533_p7 }
  0x2a   : > { %274 = vperm.xlu0 %473, %v271_v2   ;;  %p531_p6 = pneg %p530_p5 }
  0x2c   : > { %p536_p13 = pnand %p535_p10, %p531_p6 }
  0x94   : > { %v214_v6 = vpop.permute.xlu0 %213 }
  0x95   : > { %v218_v8 = vperm.slane %v214_v6, %v217_v5 }
  0x97   : > { %v220_v9 = vadd.f32 %v218_v8, %v209_v7 }
  0x99   : > { %v221_v10 = vmul.f32 %v220_v9, %v220_v9 }
  0x9b   : > { %223 = vst [vmem:[#allocation1] ss:$2 sm:$0xff] %v221_v10 }
  0x9c   : > { %v275_v42 = vpop.permute.xlu0 %274 }
  0x9d   : > { %v279_v47 = vperm.slane %v275_v42, %v217_v5 }
  0xa2   : > { %v224_v11 = vld.sshfl [vmem:[#allocation1] sm:$0xff pattern:$0x75316420]  ;;  %v225_v12 = vld.sshfl [vmem:[#allocation1 + $0x8] sm:$0xff pattern:$0x75316420] }
  0xa3   : > { %v229_v13 = vsel %vm228_vm0, %v224_v11, 0.0  ;;  %v236_v14 = vsel %vm228_vm0, %v225_v12, 0.0 }
  0xa4   : > { %v230_v15 = vrot.slane %v229_v13, 4  ;;  %v237_v16 = vrot.slane %v236_v14, 4 }
  0xa6   : > { %v231_v17 = vadd.f32 %v230_v15, %v229_v13  ;;  %v238_v18 = vadd.f32 %v237_v16, %v236_v14 }
  0xa8   : > { %v232_v19 = vrot.slane %v231_v17, 2  ;;  %v239_v20 = vrot.slane %v238_v18, 2 }
  0xaa   : > { %v233_v21 = vadd.f32 %v232_v19, %v231_v17  ;;  %v240_v22 = vadd.f32 %v239_v20, %v238_v18 }
  0xac   : > { %v234_v23 = vrot.slane %v233_v21, 1  ;;  %v241_v24 = vrot.slane %v240_v22, 1 }
  0xae   : > { %v235_v25 = vadd.f32 %v234_v23, %v233_v21  ;;  %v242_v26 = vadd.f32 %v241_v24, %v240_v22 }
  0xb0   : > { %v243_v27 = vmax.f32 %v235_v25, 1e-24  ;;  %v244_v28 = vmax.f32 %v242_v26, 1e-24 }
  0xb2   : > { %474 = vrsqrt.f32 %v243_v27  ;;  %vm261_vm3 = vweird.f32 %v244_v28  ;;  %vm251_vm5 = vweird.f32 %v243_v27 }
  0xb3   : > { %476 = vrsqrt.f32 %v244_v28 }
  0xb8   : > { %v475_v29 = vpop.eup %474 }
  0xb9   : > { %v477_v30 = vpop.eup %476  ;;  %v246_v31 = vmul.f32 %v475_v29, %v243_v27  ;;  %vm252_vm2 = vweird.f32 %v475_v29 }
  0xba   : > { %v256_v32 = vmul.f32 %v477_v30, %v244_v28  ;;  %vm262_vm1 = vweird.f32 %v477_v30  ;;  %vm253_vm6 = vmor %vm251_vm5, %vm252_vm2 }
  0xbb   : > { %v247_v33 = vmul.f32 %v475_v29, %v246_v31  ;;  %vm263_vm4 = vmor %vm261_vm3, %vm262_vm1 }
  0xbc   : > { %v257_v34 = vmul.f32 %v477_v30, %v256_v32 }
  0xbd   : > { %v248_v35 = vmul.f32 0.5, %v247_v33 }
  0xbe   : > { %v258_v36 = vmul.f32 0.5, %v257_v34 }
  0xbf   : > { %v249_v37 = vsub.f32 1.5, %v248_v35 }
  0xc0   : > { %v259_v38 = vsub.f32 1.5, %v258_v36 }
  0xc1   : > { %v250_v39 = vmul.f32 %v475_v29, %v249_v37 }
  0xc2   : > { %v260_v40 = vmul.f32 %v477_v30, %v259_v38 }
  0xc3   : > { %v254_v44 = vsel %vm253_vm6, %v475_v29, %v250_v39 }
  0xc4   : > { %v264_v41 = vsel %vm263_vm4, %v477_v30, %v260_v40 }
  0xc5   : > { %v267_v43 = vrot.slane %v264_v41, 4 }
  0xc7   : > { %v268_v45 = vsel %vm228_vm0, %v254_v44, %v267_v43 }
  0xc8   : > { %v270_v46 = vmul.f32 %v268_v45, %v220_v9 }
  0xca   : > { %v281_v48 = vmul.f32 %v279_v47, %v270_v46 }
  0xcc   : > { %v282_v49 = vsub.f32 0.0, %v281_v48 }
  0xce   : > { %v283_v50 = vmul.f32 1.442695, %v282_v49 }
  0xd0   : > { %478 = vpow2.f32 %v283_v50 }
  0xd6   : > { %v479_v51 = vpop.eup %478 }
  0xd7   : > { %v285_v52 = vadd.f32 1.0, %v479_v51 }
  0xd9   : > { %480 = vrcp.f32 %v285_v52 }
  0xdf   : > { %v481_v53 = vpop.eup %480 }
  0xe0   : > { %v287_v54 = vmul.f32 %v481_v53, %v281_v48 }
  0xe2   : > { %288 = vst [vmem:[%s206_s6] sm:$0xff] %v287_v54 }
  0xe3   : > { %539 = shalt.err (!%p536_p13)
}
  0xe4   : > { %411 = dma.vmem_to_hbm [thread:$0]  (%p669_p9), %s306_s7, 128, %s308_s8, %s290_s9  }
  0xe5 PF: > { %s319_s11 = sand.u32 1, %s574_s12   ;;  %p418_p0 = pnand %p395_p12, %p676_p11 }
  0xe6   : > { %s320_s28 = scalar_lea.sflag [#allocation4], %s319_s11 }
  0xe7   : > { %p419_p1 = pneg %p418_p0 }
  0xe9   : > { %569 = dma.done.wait (%p419_p1), %s320_s28, 128  }
  0xea   : > { %571 = vsyncadd (%p419_p1), %s320_s28, 4294967168  ;;  %s19_s17 = sadd.s32 1, %s594_s17   ;;  %s759_s12 = smov %s578_s13 }
  0xeb   : > { %p16_p2 = scmp.ge.s32.totalorder %s19_s17, 4   ;;  %s760_s13 = smov %s582_s14 }
  0xec   : > { %s761_s14 = smov %s674_s26  ;;  %s762_s15 = smov %s590_s16 }
  0xed   : > { %s763_s16 = smov %s765_s20  ;;  %18 = sbr.rel (!%p16_p2) target bundleno = 6 (0x6), region = 77 }
  0xf2   :  { %326 = vsyncpa [#allocation3], 1 }
  0xf3   :  { %328 = vsyncpa [#allocation3 + $0x1], 1 }
  0xf4   :  { %329 = vsyncpa [#allocation4], 1 }
  0xf5   :  { %331 = vsyncpa [#allocation4 + $0x1], 1 }

</bundles_post_ra>
